<compile_context>
chip_gen: v7x
topology: tpu7x:2x2x1
jax: 0.10.0
libtpu: 0.0.40
codegen_flags: <defaults>
</compile_context>

<pallas_src>
import jax
import jax.numpy as jnp
from jax import lax
from jax.experimental import pallas as pl
from jax.experimental.pallas import tpu as pltpu

MAX_LEN = 256
_HP = lax.Precision.HIGHEST   # for the tiny host-side folds / glue reduction


def _cva_classifier_kernel(xm_ref, xv_ref, gate_ref,
                           qw_ref, qb_ref, vw_ref, vb_ref, out_ref):
    # xm_ref  : (E, Bt) bf16/f32  mean over S of embedded + pos-encoded x
    # xv_ref  : (E, Bt) bf16/f32  masked mean over S of x (already / max(cnt,1))
    # gate_ref: (1, Bt) f32       1.0 iff the sequence has >= 1 non-pad token
    # qw_ref  : (E, E)  bf16/f32  W_q^T with rows pre-scaled by (W_out @ W_fc)
    # qb_ref  : (E, 1)  f32       b_q pre-scaled likewise
    # vw_ref  : (E, E)  bf16/f32  W_v^T
    # vb_ref  : (E, 1)  f32       b_v
    # out_ref : (1, Bt) f32       lane-dense (logit - folded bias) for this block
    gate = gate_ref[...]
    q = jnp.dot(qw_ref[...], xm_ref[...],
                preferred_element_type=jnp.float32) + qb_ref[...]        # (E, Bt)
    c = jnp.dot(vw_ref[...], xv_ref[...],
                preferred_element_type=jnp.float32) + vb_ref[...] * gate  # (E, Bt)
    # out_proj -> fc already folded into qw/qb: the output row is a cross-sublane
    # reduce (XLU), not an M=1 MXU matmul.
    out_ref[...] = jnp.sum(q * c, axis=0, keepdims=True)


def cva_classifier_forward(tokens, params, *, block_b=None,
                           compute_dtype=jnp.bfloat16):
    """tokens: (B, S) int32 token ids.  Returns (B, 1) float32 logits."""
    B, S = tokens.shape
    E = params["emb"].shape[-1]
    assert S <= MAX_LEN, f"sequence length {S} exceeds MAX_LEN={MAX_LEN}"

    if block_b is None:
        # Large blocks amortize per-grid-step overhead; keep >= 2 grid steps when
        # the batch allows so the "parallel" axis can shard across both v7x cores.
        half = -(-B // 2)
        block_b = min(512, max(128, 128 * (-(-half // 128))))
    assert block_b % 128 == 0, "block_b must be a multiple of 128 (lane width)"

    # --- XLA glue: gather + BOTH sequence reductions in ONE pass, emitted
    # directly in the kernel's (E, B) layout. ---
    x = params["emb"][tokens] + params["pos"][:, :S, :]                # (B, S, E)
    mask = (tokens != 0).astype(jnp.float32)                          # (B, S)
    cnt = jnp.sum(mask, axis=1)                                       # (B,)
    inv_cnt = 1.0 / jnp.maximum(cnt, 1.0)                             # exact f32
    gate = (cnt > 0).astype(jnp.float32)                              # cnt/max(cnt,1)
    red_w = jnp.stack([jnp.full_like(mask, 1.0 / S),                  # q path: mean_S
                       mask * inv_cnt[:, None]], axis=-1)             # v path: masked mean
    red = jnp.einsum("bse,bsk->keb", x, red_w, precision=_HP)         # (2, E, B) f32

    # --- fold weights offline (column-acting: y_col = W @ x_col).  The
    # out_proj->fc row is pushed into the q path, so no M=1 GEMM remains. ---
    of_col = jnp.matmul(params["out_w"], params["fc_w"], precision=_HP)      # (E, 1)
    of_b = jnp.matmul(params["out_b"], params["fc_w"], precision=_HP) \
        + params["fc_b"]                                                     # (1, 1)
    qf_w = (params["qv_w"][:, :E].T * of_col).astype(compute_dtype)          # (E, E)
    qf_b = params["qv_b"][0, :E][:, None] * of_col                           # (E, 1) f32
    v_w = params["qv_w"][:, E:].T.astype(compute_dtype)                      # (E, E)
    v_b = params["qv_b"][0, E:][:, None]                                     # (E, 1) f32

    # --- pad batch (lanes) to a block multiple; cast the streamed slabs. ---
    n_blocks = -(-B // block_b)
    B_pad = n_blocks * block_b
    red = jnp.pad(red, ((0, 0), (0, 0), (0, B_pad - B))).astype(compute_dtype)
    xm_t, xv_t = red[0], red[1]                                       # (E, B_pad)
    gate_r = jnp.pad(gate, (0, B_pad - B))[None, :]                   # (1, B_pad) f32

    Bt = block_b
    slab_spec = pl.BlockSpec((E, Bt), lambda b: (0, b))
    row_spec = pl.BlockSpec((1, Bt), lambda b: (0, b))
    # Constant-index operands never change across grid steps: single-buffer them.
    const_kw = {"pipeline_mode": pl.Buffered(1)} if hasattr(pl, "Buffered") else {}

    def const_spec(shape):
        return pl.BlockSpec(shape, lambda b: (0, 0), **const_kw)

    out = pl.pallas_call(
        _cva_classifier_kernel,
        out_shape=jax.ShapeDtypeStruct((1, B_pad), jnp.float32),
        grid=(n_blocks,),
        in_specs=[
            slab_spec,              # mean_S(x)^T
            slab_spec,              # masked-mean_S(x)^T
            row_spec,               # gate
            const_spec((E, E)),     # folded q weight
            const_spec((E, 1)),     # folded q bias
            const_spec((E, E)),     # v weight
            const_spec((E, 1)),     # v bias
        ],
        out_specs=row_spec,
        compiler_params=pltpu.CompilerParams(
            dimension_semantics=("parallel",)),
    )(xm_t, xv_t, gate_r, qf_w, qf_b, v_w, v_b)

    # Folded output bias (b_out @ W_fc + b_fc) added outside the kernel (scalar).
    return out[0, :B][:, None] + of_b


def init_params(key, vocab_size, embed_dim):
    ks = jax.random.split(key, 8)
    emb = 0.02 * jax.random.normal(ks[0], (vocab_size, embed_dim), jnp.float32)
    emb = emb.at[0].set(0.0)  # padding_idx=0
    pos = 0.02 * jax.random.normal(ks[1], (1, MAX_LEN, embed_dim), jnp.float32)
    # Linear weights stored transposed: (in_dim, out_dim)  [y = x @ W + b].
    qv_w = 0.05 * jax.random.normal(ks[2], (embed_dim, 2 * embed_dim), jnp.float32)
    qv_b = 0.05 * jax.random.normal(ks[3], (1, 2 * embed_dim), jnp.float32)
    out_w = 0.05 * jax.random.normal(ks[4], (embed_dim, embed_dim), jnp.float32)
    out_b = 0.05 * jax.random.normal(ks[5], (1, embed_dim), jnp.float32)
    fc_w = 0.05 * jax.random.normal(ks[6], (embed_dim, 1), jnp.float32)
    fc_b = 0.05 * jax.random.normal(ks[7], (1, 1), jnp.float32)
    return dict(emb=emb, pos=pos, qv_w=qv_w, qv_b=qv_b,
                out_w=out_w, out_b=out_b, fc_w=fc_w, fc_b=fc_b)


def ref_forward(tokens, params):
    """Pure-JAX reference mirroring the PyTorch module (eval mode), unfused."""
    B, S = tokens.shape
    E = params["emb"].shape[-1]
    x = params["emb"][tokens] + params["pos"][:, :S, :]
    mask = (tokens != 0).astype(jnp.float32)[..., None]               # (B, S, 1)
    qv = jnp.matmul(x, params["qv_w"], precision=_HP) + params["qv_b"]
    q, v = qv[..., :E], qv[..., E:]
    v = v * mask
    composite = jnp.sum(v, axis=1, keepdims=True) / jnp.maximum(
        jnp.sum(mask, axis=1, keepdims=True), 1.0)                    # (B, 1, E)
    out = jnp.matmul(q * composite, params["out_w"], precision=_HP) + params["out_b"]
    pooled = out.mean(axis=1)                                         # (B, E)
    return jnp.matmul(pooled, params["fc_w"], precision=_HP) + params["fc_b"]


if __name__ == "__main__":
    B, S, E, V = 2, 8, 32, 16
    key = jax.random.PRNGKey(0)
    k_tok, k_par = jax.random.split(key)

    tokens = jax.random.randint(k_tok, (B, S), 0, V, dtype=jnp.int32)
    # Force some padding (token id 0) so the mask / count / gate path is exercised.
    tokens = tokens.at[0, -2:].set(0)
    tokens = tokens.at[1, -1:].set(0)

    params = init_params(k_par, V, E)
    expected = ref_forward(tokens, params)

    # f32-operand run: validates the algebraic restructuring / weight folding tightly.
    logits_f32 = jax.block_until_ready(
        cva_classifier_forward(tokens, params, compute_dtype=jnp.float32))
    assert logits_f32.shape == (B, 1)
    assert jnp.allclose(logits_f32, expected, atol=1e-5, rtol=1e-4), (
        logits_f32, expected)

    # Default (optimized) run: bf16 MXU operands, f32 accumulation -> looser tolerance.
    logits = jax.block_until_ready(cva_classifier_forward(tokens, params))
    assert logits.shape == (B, 1)
    assert jnp.allclose(logits, expected, atol=2e-2, rtol=2e-2), (logits, expected)

    print("KERNEL_OK")
</pallas_src>

<mosaic_0001>
module attributes {stable_mosaic.version = 11 : i64} {
  func.func @_cva_classifier_kernel(%arg0: i32, %arg1: memref<32x128xf32, #tpu.memory_space<vmem>>, %arg2: memref<32x128xf32, #tpu.memory_space<vmem>>, %arg3: memref<1x128xf32, #tpu.memory_space<vmem>>, %arg4: memref<32x32xf32, #tpu.memory_space<vmem>>, %arg5: memref<32x1xf32, #tpu.memory_space<vmem>>, %arg6: memref<32x32xf32, #tpu.memory_space<vmem>>, %arg7: memref<32x1xf32, #tpu.memory_space<vmem>>, %arg8: memref<1x128xf32, #tpu.memory_space<vmem>>) attributes {dimension_semantics = [#tpu.dimension_semantics<parallel>], iteration_bounds = array<i64: 1>, scalar_prefetch = 0 : i64, scratch_operands = 0 : i64, tpu.core_type = #tpu.core_type<tc>, window_params = [{transform_indices = @transform_0, window_bounds = array<i64: 32, 128>}, {transform_indices = @transform_1, window_bounds = array<i64: 32, 128>}, {transform_indices = @transform_2, window_bounds = array<i64: 1, 128>}, {pipeline_mode = #tpu.pipeline_mode<synchronous>, transform_indices = @transform_3, window_bounds = array<i64: 32, 32>}, {pipeline_mode = #tpu.pipeline_mode<synchronous>, transform_indices = @transform_4, window_bounds = array<i64: 32, 1>}, {pipeline_mode = #tpu.pipeline_mode<synchronous>, transform_indices = @transform_5, window_bounds = array<i64: 32, 32>}, {pipeline_mode = #tpu.pipeline_mode<synchronous>, transform_indices = @transform_6, window_bounds = array<i64: 32, 1>}, {transform_indices = @transform_7, window_bounds = array<i64: 1, 128>}]} {
    %c0 = arith.constant 0 : index
    %c0_0 = arith.constant 0 : index
    %0 = vector.load %arg3[%c0, %c0_0] : memref<1x128xf32, #tpu.memory_space<vmem>>, vector<1x128xf32>
    %c0_1 = arith.constant 0 : index
    %c0_2 = arith.constant 0 : index
    %1 = vector.load %arg4[%c0_1, %c0_2] : memref<32x32xf32, #tpu.memory_space<vmem>>, vector<32x32xf32>
    %c0_3 = arith.constant 0 : index
    %c0_4 = arith.constant 0 : index
    %2 = vector.load %arg1[%c0_3, %c0_4] : memref<32x128xf32, #tpu.memory_space<vmem>>, vector<32x128xf32>
    %cst = arith.constant dense<0.000000e+00> : vector<32x128xf32>
    %3 = tpu.matmul %1, %2, %cst {dimension_numbers = #tpu.dot_dimension_numbers<[1], [0], [0], [1], [0, 0, 1, 1], [], []>} : vector<32x32xf32>, vector<32x128xf32>, vector<32x128xf32> -> vector<32x128xf32>
    %c0_5 = arith.constant 0 : index
    %c0_6 = arith.constant 0 : index
    %4 = vector.load %arg5[%c0_5, %c0_6] : memref<32x1xf32, #tpu.memory_space<vmem>>, vector<32x1xf32>
    %5 = vector.broadcast %4 : vector<32x1xf32> to vector<32x128xf32>
    %6 = arith.addf %3, %5 : vector<32x128xf32>
    %c0_7 = arith.constant 0 : index
    %c0_8 = arith.constant 0 : index
    %7 = vector.load %arg6[%c0_7, %c0_8] : memref<32x32xf32, #tpu.memory_space<vmem>>, vector<32x32xf32>
    %c0_9 = arith.constant 0 : index
    %c0_10 = arith.constant 0 : index
    %8 = vector.load %arg2[%c0_9, %c0_10] : memref<32x128xf32, #tpu.memory_space<vmem>>, vector<32x128xf32>
    %cst_11 = arith.constant dense<0.000000e+00> : vector<32x128xf32>
    %9 = tpu.matmul %7, %8, %cst_11 {dimension_numbers = #tpu.dot_dimension_numbers<[1], [0], [0], [1], [0, 0, 1, 1], [], []>} : vector<32x32xf32>, vector<32x128xf32>, vector<32x128xf32> -> vector<32x128xf32>
    %c0_12 = arith.constant 0 : index
    %c0_13 = arith.constant 0 : index
    %10 = vector.load %arg7[%c0_12, %c0_13] : memref<32x1xf32, #tpu.memory_space<vmem>>, vector<32x1xf32>
    %11 = vector.broadcast %10 : vector<32x1xf32> to vector<32x128xf32>
    %12 = vector.broadcast %0 : vector<1x128xf32> to vector<32x128xf32>
    %13 = arith.mulf %11, %12 : vector<32x128xf32>
    %14 = arith.addf %9, %13 : vector<32x128xf32>
    %15 = arith.mulf %6, %14 : vector<32x128xf32>
    %cst_14 = arith.constant dense<0.000000e+00> : vector<128xf32>
    %16 = vector.multi_reduction <add>, %15, %cst_14 [0] : vector<32x128xf32> to vector<128xf32>
    %17 = vector.shape_cast %16 : vector<128xf32> to vector<1x128xf32>
    %c0_15 = arith.constant 0 : index
    %c0_16 = arith.constant 0 : index
    %18 = vector.load %arg8[%c0_15, %c0_16] : memref<1x128xf32, #tpu.memory_space<vmem>>, vector<1x128xf32>
    tpu.vector_store %arg8[%c0_15, %c0_16], %17 {strides = array<i32>} : memref<1x128xf32, #tpu.memory_space<vmem>>, vector<1x128xf32>,
    return
  }
  func.func @transform_0(%arg0: i32) -> (i32, i32) {
    %c0_i32 = arith.constant 0 : i32
    %c0_i32_0 = arith.constant 0 : i32
    return %c0_i32, %arg0 : i32, i32
  }
  func.func @transform_1(%arg0: i32) -> (i32, i32) {
    %c0_i32 = arith.constant 0 : i32
    %c0_i32_0 = arith.constant 0 : i32
    return %c0_i32, %arg0 : i32, i32
  }
  func.func @transform_2(%arg0: i32) -> (i32, i32) {
    %c0_i32 = arith.constant 0 : i32
    %c0_i32_0 = arith.constant 0 : i32
    return %c0_i32, %arg0 : i32, i32
  }
  func.func @transform_3(%arg0: i32) -> (i32, i32) {
    %c0_i32 = arith.constant 0 : i32
    %c0_i32_0 = arith.constant 0 : i32
    %c0_i32_1 = arith.constant 0 : i32
    return %c0_i32, %c0_i32_0 : i32, i32
  }
  func.func @transform_4(%arg0: i32) -> (i32, i32) {
    %c0_i32 = arith.constant 0 : i32
    %c0_i32_0 = arith.constant 0 : i32
    %c0_i32_1 = arith.constant 0 : i32
    return %c0_i32, %c0_i32_0 : i32, i32
  }
  func.func @transform_5(%arg0: i32) -> (i32, i32) {
    %c0_i32 = arith.constant 0 : i32
    %c0_i32_0 = arith.constant 0 : i32
    %c0_i32_1 = arith.constant 0 : i32
    return %c0_i32, %c0_i32_0 : i32, i32
  }
  func.func @transform_6(%arg0: i32) -> (i32, i32) {
    %c0_i32 = arith.constant 0 : i32
    %c0_i32_0 = arith.constant 0 : i32
    %c0_i32_1 = arith.constant 0 : i32
    return %c0_i32, %c0_i32_0 : i32, i32
  }
  func.func @transform_7(%arg0: i32) -> (i32, i32) {
    %c0_i32 = arith.constant 0 : i32
    %c0_i32_0 = arith.constant 0 : i32
    return %c0_i32, %arg0 : i32, i32
  }
}

</mosaic_0001>

<bundles_post_ra>
// kernel: tpu_custom_call.1
= control target key start
LH: loop header
LB: loop body
LE: loop exit
PB: predicated region body
PF: predicated region fallthrough
CT: control target
= control target key end

     0   :  { %12 = vsyncpa [#allocation3], 0  ;;  %s645_s0 = inlined_call_operand.vmem [shape: f32[32,128], index: 0, kind: input, shape index: {}]   ;;  %s646_s1 = inlined_call_operand.vmem [shape: f32[32,128], index: 1, kind: input, shape index: {}]   ;;  %s647_s2 = inlined_call_operand.vmem [shape: f32[1,128], index: 2, kind: input, shape index: {}]   ;;  %s648_s3 = inlined_call_operand.hbm [shape: f32[32,32], index: 3, kind: input, shape index: {}]   ;;  %s649_s4 = inlined_call_operand.vmem [shape: f32[32,1], index: 4, kind: input, shape index: {}]   ;;  %s650_s5 = inlined_call_operand.hbm [shape: f32[32,32], index: 5, kind: input, shape index: {}]   ;;  %s651_s6 = inlined_call_operand.vmem [shape: f32[32,1], index: 6, kind: input, shape index: {}]   ;;  %s652_s7 = inlined_call_operand.hbm [shape: f32[1,128], index: 7, kind: output, shape index: {}]  }
   0x1   :  { %13 = vsyncpa [#allocation6], 0 }
   0x2   :  { %14 = vsyncpa [#allocation4], 0  ;;  %s504_s24 = smov [#allocation2]   ;;  %s432_s28 = scalar_lea.hbm %s648_s3, 512 }
   0x3   :  { %s26_s25 = sshll.u32 %s504_s24, 4  ;;  %p433_p0 = scmp.ne.s32.totalorder %s648_s3, %s432_s28  ;;  %s27_s25 = int_to_ptr.vmem [resolvable:$true] %s26_s25 }
   0x4   :  { %p436_p1 = scmp.lt.u32.totalorder %s432_s28, %s648_s3 }
   0x6   :  { %p438_p2 = pnand %p436_p1, %p433_p0 }
   0x8   :  { %441 = shalt.err (!%p438_p2)
}
   0x9   :  { %s442_s10 = scalar_lea.vmem %s27_s25, 512  ;;  %p447_p4 = scmp.lt.s32.totalorder %s27_s25, %s27_s25 }
   0xa   :  { %p443_p3 = scmp.ne.s32.totalorder %s27_s25, %s442_s10  ;;  %p448_p5 = scmp.lt.s32.totalorder %s442_s10, %s442_s10 }
   0xc   :  { %p449_p6 = por %p448_p5, %p447_p4 }
   0xe   :  { %p450_p7 = pnand %p449_p6, %p443_p3 }
  0x10   :  { %453 = shalt.err (!%p450_p7)
}
  0x11   :  { %s505_s11 = smov 128   ;;  %s506_s12 = smov 8  }
  0x12   :  { %32 = dma.hbm_to_vmem [thread:$0]  %s648_s3, 512, %s27_s25, [#allocation3], %s505_s11, %s505_s11, %s506_s12  }
  0x13   :  { %s507_s15 = smov [#allocation5]   ;;  %s454_s19 = scalar_lea.hbm %s650_s5, 512 }
  0x14   :  { %s40_s16 = sshll.u32 %s507_s15, 4  ;;  %p455_p8 = scmp.ne.s32.totalorder %s650_s5, %s454_s19  ;;  %s41_s16 = int_to_ptr.vmem [resolvable:$true] %s40_s16 }
  0x15   :  { %p458_p9 = scmp.lt.u32.totalorder %s454_s19, %s650_s5 }
  0x17   :  { %p460_p10 = pnand %p458_p9, %p455_p8 }
  0x19   :  { %463 = shalt.err (!%p460_p10)
}
  0x1a   :  { %s464_s24 = scalar_lea.vmem %s41_s16, 512  ;;  %p469_p12 = scmp.lt.s32.totalorder %s41_s16, %s41_s16 }
  0x1b   :  { %p465_p11 = scmp.ne.s32.totalorder %s41_s16, %s464_s24  ;;  %p470_p13 = scmp.lt.s32.totalorder %s464_s24, %s464_s24 }
  0x1d   :  { %p471_p0 = por %p470_p13, %p469_p12 }
  0x1f   :  { %p472_p1 = pnand %p471_p0, %p465_p11 }
  0x21   :  { %475 = shalt.err (!%p472_p1)
}
  0x22   :  { %46 = dma.hbm_to_vmem [thread:$0]  %s650_s5, 512, %s41_s16, [#allocation6], %s505_s11, %s505_s11, %s506_s12  }
  0x23   :  { %498 = dma.done.wait [#allocation3], 512  }
  0x24   :  { %499 = vsyncadd [#allocation3], 4294966784 }
  0x25   :  { %500 = dma.done.wait [#allocation6], 512  }
  0x26   :  { %501 = vsyncadd [#allocation6], 4294966784  ;;  %v508_v0 = vmov 0   ;;  %v60_v1 = vld [vmem:[%s645_s0] sm:$0xff]  ;;  %v61_v2 = vld [vmem:[%s645_s0 + $0x8] sm:$0xff]  ;;  %vm88_vm0 = vcmask 261120  }
  0x27   :  { %430 = vset.pattern.permute.xlu0 %v508_v0  ;;  %431 = vset.pattern.permute.xlu1 %v508_v0  ;;  %v190_v3 = vld [vmem:[%s646_s1] sm:$0xff]  ;;  %v408_v4 = vpack.c.bf16 %v61_v2, %v60_v1  ;;  %v191_v5 = vld [vmem:[%s646_s1 + $0x8] sm:$0xff]  ;;  %v62_v6 = vld [vmem:[%s645_s0 + $0x10] sm:$0xff] }
  0x28   :  { %v63_v7 = vld [vmem:[%s645_s0 + $0x18] sm:$0xff]  ;;  %v416_v8 = vpack.c.bf16 %v191_v5, %v190_v3  ;;  %v192_v10 = vld [vmem:[%s646_s1 + $0x10] sm:$0xff]  ;;  %v56_v12 = vld [vmem:[#allocation2] sm:$0xff] }
  0x29   :  { %v412_v9 = vpack.c.bf16 %v63_v7, %v62_v6  ;;  %v193_v11 = vld [vmem:[%s646_s1 + $0x18] sm:$0xff]  ;;  %409 = vmatprep.subr.bf16.mxu0 %v408_v4  ;;  %388 = vmatprep.mubr.msk.f32.mxu0 %vm88_vm0, %v56_v12  ;;  %v186_v14 = vld [vmem:[#allocation5] sm:$0xff]  ;;  %v57_v17 = vld [vmem:[#allocation2 + $0x8] sm:$0xff] }
  0x2a   :  { %v420_v13 = vpack.c.bf16 %v193_v11, %v192_v10  ;;  %417 = vmatprep.subr.bf16.mxu1 %v416_v8  ;;  %411 = vmatpush3.bf16.msra.mxu0 %v408_v4  ;;  %v194_v15 = vld [vmem:[%s651_s6] sm:$0xff]  ;;  %v195_v18 = vld [vmem:[%s651_s6 + $0x8] sm:$0xff]  ;;  %v58_v20 = vld [vmem:[#allocation2 + $0x10] sm:$0xff] }
  0x2b   :  { %419 = vmatpush3.bf16.msra.mxu1 %v416_v8  ;;  %413 = vmatprep.subr.bf16.mxu0 %v412_v9  ;;  %v64_v16 = vld [vmem:[%s649_s4] sm:$0xff]  ;;  %v187_v19 = vld [vmem:[#allocation5 + $0x8] sm:$0xff]  ;;  %v188_v21 = vld [vmem:[#allocation5 + $0x10] sm:$0xff] }
  0x2c   :  { %421 = vmatprep.subr.bf16.mxu1 %v420_v13  ;;  %402 = vmatprep.mubr.msk.f32.mxu1 %vm88_vm0, %v186_v14  ;;  %v65_v22 = vld [vmem:[%s649_s4 + $0x8] sm:$0xff]  ;;  %v59_v23 = vld [vmem:[#allocation2 + $0x18] sm:$0xff]  ;;  %v196_v24 = vld [vmem:[%s651_s6 + $0x10] sm:$0xff] }
  0x2d   :  { %200 = vperm.xlu0 %430, %v194_v15   ;;  %70 = vperm.xlu1 %431, %v64_v16   ;;  %v189_v25 = vld [vmem:[#allocation5 + $0x18] sm:$0xff]  ;;  %v66_v26 = vld [vmem:[%s649_s4 + $0x10] sm:$0xff]  ;;  %v359_v34 = vld [vmem:[%s647_s2] ss:$0 sm:$0xff]  ;;  %s509_s2 = smov [#allocation7]  }
  0x2e   :  { %415 = vmatpush3.bf16.msra.mxu0 %v412_v9  ;;  %v197_v27 = vld [vmem:[%s651_s6 + $0x18] sm:$0xff] }
  0x2f   :  { %423 = vmatpush3.bf16.msra.mxu1 %v420_v13  ;;  %v67_v28 = vld [vmem:[%s649_s4 + $0x18] sm:$0xff]  ;;  %s345_s4 = sshll.u32 %s509_s2, 4  ;;  %s346_s4 = int_to_ptr.vmem [resolvable:$true] %s345_s4 }
  0x30   :  { %s476_s6 = scalar_lea.vmem %s346_s4, 16  ;;  %s480_s9 = scalar_lea.vmem %s346_s4, 32 }
  0x31   :  { %389 = vmatmul.mubr.msk.f32.vlgmr.msra.gmra.mrb[0].mxu0 %vm88_vm0, %v57_v17  ;;  %205 = vperm.xlu0 %430, %v195_v18   ;;  %p477_p2 = scmp.ne.s32.totalorder %s346_s4, %s476_s6  ;;  %p481_p3 = scmp.lt.s32.totalorder %s346_s4, %s346_s4 }
  0x32   :  { %403 = vmatmul.mubr.msk.f32.vlgmr.msra.gmra.mrb[0].mxu1 %vm88_vm0, %v187_v19  ;;  %391 = vmatprep.mubr.msk.f32.mxu0 %vm88_vm0, %v58_v20  ;;  %p482_p4 = scmp.lt.s32.totalorder %s480_s9, %s476_s6 }
  0x33   :  { %405 = vmatprep.mubr.msk.f32.mxu1 %vm88_vm0, %v188_v21  ;;  %75 = vperm.xlu1 %431, %v65_v22  }
  0x34   :  { %p483_p5 = por %p482_p4, %p481_p3 }
  0x35   :  { %392 = vmatmul.mubr.msk.f32.gmra.mrb[2].mxu0 %vm88_vm0, %v59_v23  ;;  %210 = vperm.xlu0 %430, %v196_v24  }
  0x36   :  { %406 = vmatmul.mubr.msk.f32.gmra.mrb[2].mxu1 %vm88_vm0, %v189_v25  ;;  %p484_p6 = pnand %p483_p5, %p477_p2 }
  0x37   :  { %80 = vperm.xlu1 %431, %v66_v26  }
  0x39   :  { %215 = vperm.xlu0 %430, %v197_v27  }
  0x3b   :  { %85 = vperm.xlu1 %431, %v67_v28  }
  0xac   :  { %v201_v29 = vpop.permute.xlu0 %200  ;;  %v71_v30 = vpop.permute.xlu1 %70 }
  0xad   :  { %v224_v39 = vmul.f32 %v359_v34, %v201_v29 }
  0xb0   :  { %v206_v31 = vpop.permute.xlu0 %205 }
  0xb1   :  { %v225_v36 = vmul.f32 %v359_v34, %v206_v31 }
  0xb2   :  { %v76_v32 = vpop.permute.xlu1 %75 }
  0xb4   :  { %v211_v33 = vpop.permute.xlu0 %210 }
  0xb5   :  { %v226_v51 = vmul.f32 %v359_v34, %v211_v33 }
  0xb6   :  { %v81_v35 = vpop.permute.xlu1 %80 }
  0xb8   :  { %v216_v37 = vpop.permute.xlu0 %215 }
  0xb9   :  { %v227_v47 = vmul.f32 %v359_v34, %v216_v37 }
  0xba   :  { %v86_v48 = vpop.permute.xlu1 %85 }
 0x104   :  { %v390_v38 = vpop.f32.mrb[0].mxu0 }
 0x105   :  { %v173_v40 = vadd.f32 %v390_v38, %v76_v32  ;;  %v404_v41 = vpop.f32.mrb[0].mxu1  ;;  %v167_v42 = vpop.f32.mrb[1].mxu0 }
 0x106   :  { %v312_v43 = vadd.f32 %v404_v41, %v225_v36  ;;  %v168_v44 = vadd.f32 %v167_v42, %v71_v30  ;;  %v306_v45 = vpop.f32.mrb[1].mxu1 }
 0x107   :  { %v307_v46 = vadd.f32 %v306_v45, %v224_v39 }
 0x108   :  { %v326_v49 = vmul.f32 %v312_v43, %v173_v40  ;;  %v393_v50 = vpop.f32.mrb[2].mxu0 }
 0x109   :  { %v325_v52 = vmul.f32 %v307_v46, %v168_v44  ;;  %v183_v53 = vadd.f32 %v393_v50, %v86_v48  ;;  %v407_v54 = vpop.f32.mrb[2].mxu1  ;;  %v177_v55 = vpop.f32.mrb[3].mxu0 }
 0x10a   :  { %v322_v56 = vadd.f32 %v407_v54, %v227_v47  ;;  %v178_v57 = vadd.f32 %v177_v55, %v81_v35  ;;  %v316_v58 = vpop.f32.mrb[3].mxu1 }
 0x10b   :  { %v329_v59 = vadd.f32 %v326_v49, %v325_v52  ;;  %v317_v60 = vadd.f32 %v316_v58, %v226_v51 }
 0x10c   :  { %v328_v61 = vmul.f32 %v322_v56, %v183_v53 }
 0x10d   :  { %v327_v62 = vmul.f32 %v317_v60, %v178_v57 }
 0x10f   :  { %v330_v63 = vadd.f32 %v329_v59, %v327_v62 }
 0x111   :  { %v331_v0 = vadd.f32 %v330_v63, %v328_v61 }
 0x113   :  { %v332_v1 = vrot.slane %v331_v0, 4 }
 0x115   :  { %v333_v2 = vadd.f32 %v332_v1, %v331_v0 }
 0x117   :  { %v334_v3 = vrot.slane %v333_v2, 2 }
 0x119   :  { %v335_v4 = vadd.f32 %v334_v3, %v333_v2 }
 0x11b   :  { %v336_v5 = vrot.slane %v335_v4, 1 }
 0x11d   :  { %v337_v6 = vadd.f32 %v336_v5, %v335_v4 }
 0x11f   :  { %338 = vst [vmem:[#allocation7] sm:$0x1] %v337_v6 }
 0x120   :  { %487 = shalt.err (!%p484_p6)
}
 0x121   :  { %s488_s12 = scalar_lea.hbm %s652_s7, 16 }
 0x122   :  { %p489_p7 = scmp.ne.s32.totalorder %s652_s7, %s488_s12  ;;  %p492_p8 = scmp.lt.u32.totalorder %s488_s12, %s652_s7 }
 0x124   :  { %p494_p9 = pnand %p492_p8, %p489_p7 }
 0x126   :  { %497 = shalt.err (!%p494_p9)
}
 0x127   :  { %348 = dma.vmem_to_hbm [thread:$0]  %s346_s4, 16, %s652_s7, [#allocation4]  }
 0x128   :  { %502 = dma.done.wait [#allocation4], 16  }
 0x129   :  { %503 = vsyncadd [#allocation4], 4294967280 }
 0x12a   :  { %352 = vsyncpa [#allocation3], 1 }
 0x12b   :  { %353 = vsyncpa [#allocation6], 1 }
 0x12c   :  { %354 = vsyncpa [#allocation4], 1 }

</bundles_post_ra>
